<compile_context>
chip_gen: v5e
topology: v5e:2x2
jax: 0.10.0
libtpu: 0.0.40
codegen_flags: <defaults>
</compile_context>

<pallas_src>
import math

import jax
import jax.numpy as jnp
from jax import lax
from jax.experimental import pallas as pl
from jax.experimental.pallas import tpu as pltpu


def _round_up(n, m):
    return (n + m - 1) // m * m


def _cdiv(a, b):
    return (a + b - 1) // b


def deepnet_kernel(x_ref,
                   w1_ref, b1_ref,
                   w2_ref, b2_ref,
                   w3_ref, b3_ref,
                   w4_ref, b4_ref,
                   oT_ref):
    """x tile: (TB, D_in) f32 in native layout. Weights: (out, in) bf16.
    Biases b1..b3: (out, 1) epilogue dtype; b4: (out, 1) f32.
    Output tile: (D_out, TB) bf16 -- lane-dense along the batch tile."""
    edt = b1_ref.dtype                        # epilogue dtype (bf16 on v6e/v7x)
    x = x_ref[...].astype(jnp.bfloat16)       # in-kernel cast (no wrapper pass)

    # fc1 -> relu (drop1 = identity at inference). Contract D_in of W1 with
    # D_in of the native-layout x tile -> lane-dense (H1, TB); the rhs
    # transpose happens on-chip.
    h = lax.dot_general(w1_ref[...], x, (((1,), (1,)), ((), ())),
                        preferred_element_type=jnp.float32)
    h = jnp.maximum(h.astype(edt) + b1_ref[...], 0).astype(jnp.bfloat16)

    # fc2 -> relu (drop2 = identity at inference)
    h = jnp.dot(w2_ref[...], h, preferred_element_type=jnp.float32)
    h = jnp.maximum(h.astype(edt) + b2_ref[...], 0).astype(jnp.bfloat16)

    # fc3 -> relu
    h = jnp.dot(w3_ref[...], h, preferred_element_type=jnp.float32)
    h = jnp.maximum(h.astype(edt) + b3_ref[...], 0).astype(jnp.bfloat16)

    # fc4 (no activation): f32 accumulate + bias, bf16 lane-dense store.
    out = jnp.dot(w4_ref[...], h, preferred_element_type=jnp.float32)
    oT_ref[...] = (out + b4_ref[...]).astype(oT_ref.dtype)


def deepnet_forward(x, params, *, tile_b=4096, transpose_output=True):
    """x: (B, D_in) float; params: PyTorch-layout weights (out, in) + biases (out,).

    tile_b: max batch-tile (lane) width, a multiple of 256. The actual tile TB
    is capped at ceil(B/2) rounded up to 256 so the parallel batch axis has at
    least two blocks whenever possible (v7x megacore sharding).
    """
    assert tile_b % 256 == 0 and tile_b >= 256, "tile_b must be a multiple of 256"
    B, d_in = x.shape
    h1 = params["w1"].shape[0]
    h2 = params["w2"].shape[0]
    h3 = params["w3"].shape[0]
    d_out = params["w4"].shape[0]

    # bf16 epilogue where the VPU is bf16-native (v6e/v7x); f32 on v5e/older.
    kind = jax.devices()[0].device_kind.lower()
    edt = jnp.float32 if any(v in kind for v in ("v2", "v3", "v4", "v5")) \
        else jnp.bfloat16

    TB = max(256, min(tile_b, _round_up(_cdiv(B, 2), 256)))
    B_pad = _round_up(B, TB)
    # Pad only the batch dim with zeros so blocks divide exactly; no transpose
    # and no dtype-cast pass over x in HBM. Padded rows are sliced off below.
    x_in = x if B_pad == B else jnp.pad(x, ((0, B_pad - B), (0, 0)))

    ws = [params[f"w{i}"].astype(jnp.bfloat16) for i in (1, 2, 3, 4)]  # (out, in)
    bs = [params[f"b{i}"].reshape(-1, 1).astype(edt) for i in (1, 2, 3)]
    bs.append(params["b4"].reshape(-1, 1).astype(jnp.float32))

    grid = (B_pad // TB,)

    def resident(a):  # constant block index -> stays VMEM-resident across steps
        return pl.BlockSpec(a.shape, lambda i: (0, 0))

    in_specs = [pl.BlockSpec((TB, d_in), lambda i: (i, 0))]
    args = [x_in]
    for w, b in zip(ws, bs):
        in_specs += [resident(w), resident(b)]
        args += [w, b]

    flops = 2 * B_pad * (d_in * h1 + h1 * h2 + h2 * h3 + h3 * d_out)
    bytes_accessed = (int(x_in.size) * x_in.dtype.itemsize
                      + sum(int(w.size) * 2 for w in ws)
                      + sum(int(b.size) * b.dtype.itemsize for b in bs)
                      + d_out * B_pad * 2)

    outT = pl.pallas_call(
        deepnet_kernel,
        out_shape=jax.ShapeDtypeStruct((d_out, B_pad), jnp.bfloat16),
        grid=grid,
        in_specs=in_specs,
        out_specs=pl.BlockSpec((d_out, TB), lambda i: (0, i)),
        compiler_params=pltpu.CompilerParams(
            dimension_semantics=("parallel",)),      # megacore split on v7x
        cost_estimate=pl.CostEstimate(
            flops=flops, transcendentals=0, bytes_accessed=bytes_accessed),
    )(*args)

    if not transpose_output:
        return outT[:, :B]                 # (D_out, B) bf16 slab, no extra pass
    return outT.T[:B].astype(x.dtype)      # PyTorch layout (B, D_out)


def init_params(key, d_in, hs, d_out):
    """nn.Linear-style uniform init; weights kept in PyTorch (out, in) layout."""
    dims = [d_in] + list(hs) + [d_out]
    params = {}
    for i in range(4):
        key, kw, kb = jax.random.split(key, 3)
        fan_in, fan_out = dims[i], dims[i + 1]
        bound = 1.0 / math.sqrt(fan_in)
        params[f"w{i+1}"] = jax.random.uniform(
            kw, (fan_out, fan_in), jnp.float32, -bound, bound)
        params[f"b{i+1}"] = jax.random.uniform(
            kb, (fan_out,), jnp.float32, -bound, bound)
    return params


def deepnet_reference(x, params):
    h = jnp.maximum(x @ params["w1"].T + params["b1"], 0.0)
    h = jnp.maximum(h @ params["w2"].T + params["b2"], 0.0)
    h = jnp.maximum(h @ params["w3"].T + params["b3"], 0.0)
    return h @ params["w4"].T + params["b4"]


if __name__ == "__main__":
    D_in, HS, D_out = 32, (64, 64, 32), 16

    key = jax.random.PRNGKey(0)
    key, kx1, kx2, kx3 = jax.random.split(key, 4)
    params = init_params(key, D_in, HS, D_out)

    # Case 1: batch not a tile multiple -> exercises zero-padding path.
    B1 = 200
    x1 = jax.random.normal(kx1, (B1, D_in), jnp.float32)
    out1 = jax.block_until_ready(deepnet_forward(x1, params))
    ref1 = deepnet_reference(x1, params)
    assert out1.shape == (B1, D_out)
    assert jnp.allclose(out1, ref1, atol=5e-2, rtol=5e-2), \
        float(jnp.max(jnp.abs(out1 - ref1)))

    # Case 2: batch gives a 2-step parallel grid (megacore cap TB=256).
    B2 = 512
    x2 = jax.random.normal(kx2, (B2, D_in), jnp.float32)
    out2 = jax.block_until_ready(deepnet_forward(x2, params))
    ref2 = deepnet_reference(x2, params)
    assert out2.shape == (B2, D_out)
    assert jnp.allclose(out2, ref2, atol=5e-2, rtol=5e-2), \
        float(jnp.max(jnp.abs(out2 - ref2)))

    # Case 3: tiny batch.
    B3 = 8
    x3 = jax.random.normal(kx3, (B3, D_in), jnp.float32)
    out3 = jax.block_until_ready(deepnet_forward(x3, params))
    ref3 = deepnet_reference(x3, params)
    assert out3.shape == (B3, D_out)
    assert jnp.allclose(out3, ref3, atol=5e-2, rtol=5e-2), \
        float(jnp.max(jnp.abs(out3 - ref3)))

    print("KERNEL_OK")
</pallas_src>

<mosaic_0001>
module attributes {stable_mosaic.version = 11 : i64} {
  func.func @deepnet_kernel(%arg0: i32, %arg1: memref<256x32xf32, #tpu.memory_space<vmem>>, %arg2: memref<64x32xbf16, #tpu.memory_space<vmem>>, %arg3: memref<64x1xbf16, #tpu.memory_space<vmem>>, %arg4: memref<64x64xbf16, #tpu.memory_space<vmem>>, %arg5: memref<64x1xbf16, #tpu.memory_space<vmem>>, %arg6: memref<32x64xbf16, #tpu.memory_space<vmem>>, %arg7: memref<32x1xbf16, #tpu.memory_space<vmem>>, %arg8: memref<16x32xbf16, #tpu.memory_space<vmem>>, %arg9: memref<16x1xf32, #tpu.memory_space<vmem>>, %arg10: memref<16x256xbf16, #tpu.memory_space<vmem>>) attributes {dimension_semantics = [#tpu.dimension_semantics<parallel>], iteration_bounds = array<i64: 1>, scalar_prefetch = 0 : i64, scratch_operands = 0 : i64, tpu.core_type = #tpu.core_type<tc>, window_params = [{transform_indices = @transform_0, window_bounds = array<i64: 256, 32>}, {pipeline_mode = #tpu.pipeline_mode<synchronous>, transform_indices = @transform_1, window_bounds = array<i64: 64, 32>}, {pipeline_mode = #tpu.pipeline_mode<synchronous>, transform_indices = @transform_2, window_bounds = array<i64: 64, 1>}, {pipeline_mode = #tpu.pipeline_mode<synchronous>, transform_indices = @transform_3, window_bounds = array<i64: 64, 64>}, {pipeline_mode = #tpu.pipeline_mode<synchronous>, transform_indices = @transform_4, window_bounds = array<i64: 64, 1>}, {pipeline_mode = #tpu.pipeline_mode<synchronous>, transform_indices = @transform_5, window_bounds = array<i64: 32, 64>}, {pipeline_mode = #tpu.pipeline_mode<synchronous>, transform_indices = @transform_6, window_bounds = array<i64: 32, 1>}, {pipeline_mode = #tpu.pipeline_mode<synchronous>, transform_indices = @transform_7, window_bounds = array<i64: 16, 32>}, {pipeline_mode = #tpu.pipeline_mode<synchronous>, transform_indices = @transform_8, window_bounds = array<i64: 16, 1>}, {transform_indices = @transform_9, window_bounds = array<i64: 16, 256>}]} {
    %c0 = arith.constant 0 : index
    %c0_0 = arith.constant 0 : index
    %0 = vector.load %arg1[%c0, %c0_0] : memref<256x32xf32, #tpu.memory_space<vmem>>, vector<256x32xf32>
    %1 = arith.truncf %0 : vector<256x32xf32> to vector<256x32xbf16>
    %c0_1 = arith.constant 0 : index
    %c0_2 = arith.constant 0 : index
    %2 = vector.load %arg2[%c0_1, %c0_2] : memref<64x32xbf16, #tpu.memory_space<vmem>>, vector<64x32xbf16>
    %cst = arith.constant dense<0.000000e+00> : vector<64x256xf32>
    %3 = tpu.matmul %2, %1, %cst {dimension_numbers = #tpu.dot_dimension_numbers<[1], [1], [0], [0], [0, 0, 1, 0], [], []>} : vector<64x32xbf16>, vector<256x32xbf16>, vector<64x256xf32> -> vector<64x256xf32>
    %4 = arith.truncf %3 : vector<64x256xf32> to vector<64x256xbf16>
    %c0_3 = arith.constant 0 : index
    %c0_4 = arith.constant 0 : index
    %5 = vector.load %arg3[%c0_3, %c0_4] : memref<64x1xbf16, #tpu.memory_space<vmem>>, vector<64x1xbf16>
    %6 = vector.broadcast %5 : vector<64x1xbf16> to vector<64x256xbf16>
    %7 = arith.addf %4, %6 : vector<64x256xbf16>
    %cst_5 = arith.constant 0.000000e+00 : bf16
    %8 = vector.broadcast %cst_5 : bf16 to vector<64x256xbf16>
    %9 = arith.maximumf %7, %8 : vector<64x256xbf16>
    %c0_6 = arith.constant 0 : index
    %c0_7 = arith.constant 0 : index
    %10 = vector.load %arg4[%c0_6, %c0_7] : memref<64x64xbf16, #tpu.memory_space<vmem>>, vector<64x64xbf16>
    %cst_8 = arith.constant dense<0.000000e+00> : vector<64x256xf32>
    %11 = tpu.matmul %10, %9, %cst_8 {dimension_numbers = #tpu.dot_dimension_numbers<[1], [0], [0], [1], [0, 0, 1, 1], [], []>} : vector<64x64xbf16>, vector<64x256xbf16>, vector<64x256xf32> -> vector<64x256xf32>
    %12 = arith.truncf %11 : vector<64x256xf32> to vector<64x256xbf16>
    %c0_9 = arith.constant 0 : index
    %c0_10 = arith.constant 0 : index
    %13 = vector.load %arg5[%c0_9, %c0_10] : memref<64x1xbf16, #tpu.memory_space<vmem>>, vector<64x1xbf16>
    %14 = vector.broadcast %13 : vector<64x1xbf16> to vector<64x256xbf16>
    %15 = arith.addf %12, %14 : vector<64x256xbf16>
    %cst_11 = arith.constant 0.000000e+00 : bf16
    %16 = vector.broadcast %cst_11 : bf16 to vector<64x256xbf16>
    %17 = arith.maximumf %15, %16 : vector<64x256xbf16>
    %c0_12 = arith.constant 0 : index
    %c0_13 = arith.constant 0 : index
    %18 = vector.load %arg6[%c0_12, %c0_13] : memref<32x64xbf16, #tpu.memory_space<vmem>>, vector<32x64xbf16>
    %cst_14 = arith.constant dense<0.000000e+00> : vector<32x256xf32>
    %19 = tpu.matmul %18, %17, %cst_14 {dimension_numbers = #tpu.dot_dimension_numbers<[1], [0], [0], [1], [0, 0, 1, 1], [], []>} : vector<32x64xbf16>, vector<64x256xbf16>, vector<32x256xf32> -> vector<32x256xf32>
    %20 = arith.truncf %19 : vector<32x256xf32> to vector<32x256xbf16>
    %c0_15 = arith.constant 0 : index
    %c0_16 = arith.constant 0 : index
    %21 = vector.load %arg7[%c0_15, %c0_16] : memref<32x1xbf16, #tpu.memory_space<vmem>>, vector<32x1xbf16>
    %22 = vector.broadcast %21 : vector<32x1xbf16> to vector<32x256xbf16>
    %23 = arith.addf %20, %22 : vector<32x256xbf16>
    %cst_17 = arith.constant 0.000000e+00 : bf16
    %24 = vector.broadcast %cst_17 : bf16 to vector<32x256xbf16>
    %25 = arith.maximumf %23, %24 : vector<32x256xbf16>
    %c0_18 = arith.constant 0 : index
    %c0_19 = arith.constant 0 : index
    %26 = vector.load %arg8[%c0_18, %c0_19] : memref<16x32xbf16, #tpu.memory_space<vmem>>, vector<16x32xbf16>
    %cst_20 = arith.constant dense<0.000000e+00> : vector<16x256xf32>
    %27 = tpu.matmul %26, %25, %cst_20 {dimension_numbers = #tpu.dot_dimension_numbers<[1], [0], [0], [1], [0, 0, 1, 1], [], []>} : vector<16x32xbf16>, vector<32x256xbf16>, vector<16x256xf32> -> vector<16x256xf32>
    %c0_21 = arith.constant 0 : index
    %c0_22 = arith.constant 0 : index
    %28 = vector.load %arg9[%c0_21, %c0_22] : memref<16x1xf32, #tpu.memory_space<vmem>>, vector<16x1xf32>
    %29 = vector.broadcast %28 : vector<16x1xf32> to vector<16x256xf32>
    %30 = arith.addf %27, %29 : vector<16x256xf32>
    %31 = arith.truncf %30 : vector<16x256xf32> to vector<16x256xbf16>
    %c0_23 = arith.constant 0 : index
    %c0_24 = arith.constant 0 : index
    %32 = vector.load %arg10[%c0_23, %c0_24] : memref<16x256xbf16, #tpu.memory_space<vmem>>, vector<16x256xbf16>
    tpu.vector_store %arg10[%c0_23, %c0_24], %31 {strides = array<i32>} : memref<16x256xbf16, #tpu.memory_space<vmem>>, vector<16x256xbf16>,
    return
  }
  func.func @transform_0(%arg0: i32) -> (i32, i32) {
    %c0_i32 = arith.constant 0 : i32
    %c0_i32_0 = arith.constant 0 : i32
    return %arg0, %c0_i32 : i32, i32
  }
  func.func @transform_1(%arg0: i32) -> (i32, i32) {
    %c0_i32 = arith.constant 0 : i32
    %c0_i32_0 = arith.constant 0 : i32
    %c0_i32_1 = arith.constant 0 : i32
    return %c0_i32, %c0_i32_0 : i32, i32
  }
  func.func @transform_2(%arg0: i32) -> (i32, i32) {
    %c0_i32 = arith.constant 0 : i32
    %c0_i32_0 = arith.constant 0 : i32
    %c0_i32_1 = arith.constant 0 : i32
    return %c0_i32, %c0_i32_0 : i32, i32
  }
  func.func @transform_3(%arg0: i32) -> (i32, i32) {
    %c0_i32 = arith.constant 0 : i32
    %c0_i32_0 = arith.constant 0 : i32
    %c0_i32_1 = arith.constant 0 : i32
    return %c0_i32, %c0_i32_0 : i32, i32
  }
  func.func @transform_4(%arg0: i32) -> (i32, i32) {
    %c0_i32 = arith.constant 0 : i32
    %c0_i32_0 = arith.constant 0 : i32
    %c0_i32_1 = arith.constant 0 : i32
    return %c0_i32, %c0_i32_0 : i32, i32
  }
  func.func @transform_5(%arg0: i32) -> (i32, i32) {
    %c0_i32 = arith.constant 0 : i32
    %c0_i32_0 = arith.constant 0 : i32
    %c0_i32_1 = arith.constant 0 : i32
    return %c0_i32, %c0_i32_0 : i32, i32
  }
  func.func @transform_6(%arg0: i32) -> (i32, i32) {
    %c0_i32 = arith.constant 0 : i32
    %c0_i32_0 = arith.constant 0 : i32
    %c0_i32_1 = arith.constant 0 : i32
    return %c0_i32, %c0_i32_0 : i32, i32
  }
  func.func @transform_7(%arg0: i32) -> (i32, i32) {
    %c0_i32 = arith.constant 0 : i32
    %c0_i32_0 = arith.constant 0 : i32
    %c0_i32_1 = arith.constant 0 : i32
    return %c0_i32, %c0_i32_0 : i32, i32
  }
  func.func @transform_8(%arg0: i32) -> (i32, i32) {
    %c0_i32 = arith.constant 0 : i32
    %c0_i32_0 = arith.constant 0 : i32
    %c0_i32_1 = arith.constant 0 : i32
    return %c0_i32, %c0_i32_0 : i32, i32
  }
  func.func @transform_9(%arg0: i32) -> (i32, i32) {
    %c0_i32 = arith.constant 0 : i32
    %c0_i32_0 = arith.constant 0 : i32
    return %c0_i32, %arg0 : i32, i32
  }
}

</mosaic_0001>

<bundles_post_ra>
// kernel: tpu_custom_call.1
= control target key start
LH: loop header
LB: loop body
LE: loop exit
PB: predicated region body
PF: predicated region fallthrough
CT: control target
= control target key end

     0   :  { %vm110_vm0 = vcmask 261120   ;;  %s1330_s0 = inlined_call_operand.vmem [shape: f32[256,32], index: 0, kind: input, shape index: {}]   ;;  %s1331_s1 = inlined_call_operand.vmem [shape: bf16[64,32], index: 1, kind: input, shape index: {}]   ;;  %s1332_s2 = inlined_call_operand.vmem [shape: bf16[64,1], index: 2, kind: input, shape index: {}]   ;;  %s1333_s3 = inlined_call_operand.vmem [shape: bf16[64,64], index: 3, kind: input, shape index: {}]   ;;  %s1334_s4 = inlined_call_operand.vmem [shape: bf16[64,1], index: 4, kind: input, shape index: {}]   ;;  %s1335_s5 = inlined_call_operand.vmem [shape: bf16[32,64], index: 5, kind: input, shape index: {}]   ;;  %s1336_s6 = inlined_call_operand.vmem [shape: bf16[32,1], index: 6, kind: input, shape index: {}]   ;;  %s1337_s7 = inlined_call_operand.vmem [shape: bf16[16,32], index: 7, kind: input, shape index: {}]   ;;  %s1338_s8 = inlined_call_operand.vmem [shape: f32[16,1], index: 8, kind: input, shape index: {}]   ;;  %s1339_s9 = inlined_call_operand.hbm [shape: bf16[16,256], index: 9, kind: output, shape index: {}]  }
   0x1   :  { %v48_v0 = vld [vmem:[%s1330_s0 + $0x70] sm:$0xff]  ;;  %v49_v1 = vld [vmem:[%s1330_s0 + $0x78] sm:$0xff]  ;;  %v46_v6 = vld [vmem:[%s1330_s0 + $0x60] sm:$0xff] }
   0x2   :  { %v64_v2 = vld [vmem:[%s1330_s0 + $0xf0] sm:$0xff]  ;;  %v73_v3 = vpack.c.bf16 %v49_v1, %v48_v0  ;;  %v65_v4 = vld [vmem:[%s1330_s0 + $0xf8] sm:$0xff]  ;;  %v47_v7 = vld [vmem:[%s1330_s0 + $0x68] sm:$0xff] }
   0x3   :  { %v81_v5 = vpack.c.bf16 %v65_v4, %v64_v2  ;;  %v62_v9 = vld [vmem:[%s1330_s0 + $0xe0] sm:$0xff]  ;;  %v63_v10 = vld [vmem:[%s1330_s0 + $0xe8] sm:$0xff]  ;;  %v72_v12 = vpack.c.bf16 %v47_v7, %v46_v6 }
   0x4   :  { %v145_v8 = vsel %vm110_vm0, %v73_v3, 0  ;;  %v80_v13 = vpack.c.bf16 %v63_v10, %v62_v9 }
   0x5   :  { %171 = vmatpush.bf16.xpose.msra.mxu0 %v145_v8  ;;  %v169_v11 = vsel %vm110_vm0, %v81_v5, 0 }
   0x6   :  { %200 = vmatpush.bf16.xpose.msra.mxu1 %v169_v11 }
   0x7   :  { %14 = vsyncpa [#allocation3], 0  ;;  %v142_v14 = vsel %vm110_vm0, %v72_v12, 0  ;;  %v166_v15 = vsel %vm110_vm0, %v80_v13, 0  ;;  %v44_v16 = vld [vmem:[%s1330_s0 + $0x50] sm:$0xff]  ;;  %v45_v17 = vld [vmem:[%s1330_s0 + $0x58] sm:$0xff] }
   0x8   :  { %v60_v18 = vld [vmem:[%s1330_s0 + $0xd0] sm:$0xff]  ;;  %v61_v19 = vld [vmem:[%s1330_s0 + $0xd8] sm:$0xff]  ;;  %v71_v20 = vpack.c.bf16 %v45_v17, %v44_v16  ;;  %v42_v24 = vld [vmem:[%s1330_s0 + $0x40] sm:$0xff]  ;;  %v1009_v39 = vmov 0   ;;  %vm433_vm1 = vcmask 523264   ;;  %s1011_s24 = smov [#allocation2]  }
   0x9   :  { %v79_v21 = vpack.c.bf16 %v61_v19, %v60_v18  ;;  %v43_v25 = vld [vmem:[%s1330_s0 + $0x48] sm:$0xff]  ;;  %v58_v26 = vld [vmem:[%s1330_s0 + $0xc0] sm:$0xff]  ;;  %v40_v32 = vld [vmem:[%s1330_s0 + $0x30] sm:$0xff]  ;;  %980 = vset.pattern.permute.xlu0 %v1009_v39  ;;  %981 = vset.pattern.permute.xlu1 %v1009_v39  ;;  %s1012_s27 = smov 128   ;;  %s1013_s28 = smov 8  }
   0xa   :  { %v139_v22 = vsel %vm110_vm0, %v71_v20, 0  ;;  %v59_v27 = vld [vmem:[%s1330_s0 + $0xc8] sm:$0xff]  ;;  %v70_v28 = vpack.c.bf16 %v43_v25, %v42_v24  ;;  %v41_v33 = vld [vmem:[%s1330_s0 + $0x38] sm:$0xff]  ;;  %v56_v34 = vld [vmem:[%s1330_s0 + $0xb0] sm:$0xff]  ;;  %982 = vset.pattern.permute.xlu2 %v1009_v39 }
   0xb   :  { %v163_v23 = vsel %vm110_vm0, %v79_v21, 0  ;;  %v78_v29 = vpack.c.bf16 %v59_v27, %v58_v26  ;;  %v57_v35 = vld [vmem:[%s1330_s0 + $0xb8] sm:$0xff]  ;;  %v69_v36 = vpack.c.bf16 %v41_v33, %v40_v32  ;;  %v38_v42 = vld [vmem:[%s1330_s0 + $0x20] sm:$0xff]  ;;  %v39_v43 = vld [vmem:[%s1330_s0 + $0x28] sm:$0xff] }
   0xc   :  { %v136_v30 = vsel %vm110_vm0, %v70_v28, 0  ;;  %v243_v37 = vld [vmem:[%s1332_s2 + $0x18] sm:$0xf]  ;;  %v77_v38 = vpack.c.bf16 %v57_v35, %v56_v34  ;;  %v54_v44 = vld [vmem:[%s1330_s0 + $0xa0] sm:$0xff]  ;;  %v55_v45 = vld [vmem:[%s1330_s0 + $0xa8] sm:$0xff]  ;;  %v68_v48 = vpack.c.bf16 %v39_v43, %v38_v42 }
   0xd   :  { %172 = vmatpush.bf16.xpose.msra.mxu0 %v142_v14  ;;  %v160_v31 = vsel %vm110_vm0, %v78_v29, 0  ;;  %301 = vperm.xlu0 %980, %v243_v37   ;;  %v133_v40 = vsel %vm110_vm0, %v69_v36, 0  ;;  %v244_v46 = vld [vmem:[%s1332_s2 + $0x1c] sm:$0xf]  ;;  %v241_v47 = vld [vmem:[%s1332_s2 + $0x10] sm:$0xf]  ;;  %v76_v49 = vpack.c.bf16 %v55_v45, %v54_v44 }
   0xe   :  { %201 = vmatpush.bf16.xpose.msra.mxu1 %v166_v15  ;;  %v157_v41 = vsel %vm110_vm0, %v77_v38, 0  ;;  %283 = vperm.xlu1 %981, %v241_v47   ;;  %v130_v50 = vsel %vm110_vm0, %v68_v48, 0  ;;  %v36_v52 = vld [vmem:[%s1330_s0 + $0x10] sm:$0xff]  ;;  %v37_v53 = vld [vmem:[%s1330_s0 + $0x18] sm:$0xff]  ;;  %v237_v57 = vld [vmem:[%s1332_s2] sm:$0xf] }
   0xf   :  { %v154_v51 = vsel %vm110_vm0, %v76_v49, 0  ;;  %v242_v54 = vld [vmem:[%s1332_s2 + $0x14] sm:$0xf]  ;;  %v53_v56 = vld [vmem:[%s1330_s0 + $0x98] sm:$0xff]  ;;  %v67_v58 = vpack.c.bf16 %v37_v53, %v36_v52  ;;  %v34_v62 = vld [vmem:[%s1330_s0] sm:$0xff] }
  0x10   :  { %v52_v55 = vld [vmem:[%s1330_s0 + $0x90] sm:$0xff]  ;;  %v35_v63 = vld [vmem:[%s1330_s0 + $0x8] sm:$0xff]  ;;  %v50_v0 = vld [vmem:[%s1330_s0 + $0x80] sm:$0xff]  ;;  %v1010_v44 = vmov 839922192  }
  0x11   :  { %v75_v59 = vpack.c.bf16 %v53_v56, %v52_v55  ;;  %v127_v60 = vsel %vm110_vm0, %v67_v58, 0  ;;  %v51_v1 = vld [vmem:[%s1330_s0 + $0x88] sm:$0xff]  ;;  %v238_v2 = vld [vmem:[%s1332_s2 + $0x4] sm:$0xf]  ;;  %v519_v3 = vld [vmem:[%s1334_s4 + $0x1c] sm:$0xf]  ;;  %v66_v4 = vpack.c.bf16 %v35_v63, %v34_v62  ;;  %v251_v45 = vunpack.c.l.s4 %v1010_v44 }
  0x12   :  { %v74_v5 = vpack.c.bf16 %v51_v1, %v50_v0  ;;  %v964_v8 = vld [vmem:[%s1331_s1] sm:$0xff]  ;;  %v514_v9 = vld [vmem:[%s1334_s4 + $0x8] sm:$0xf]  ;;  %v516_v10 = vld [vmem:[%s1334_s4 + $0x10] sm:$0xf] }
  0x13   :  { %v151_v61 = vsel %vm110_vm0, %v75_v59, 0  ;;  %v124_v6 = vsel %vm110_vm0, %v66_v4, 0  ;;  %v239_v11 = vld [vmem:[%s1332_s2 + $0x8] sm:$0xf]  ;;  %v513_v12 = vld [vmem:[%s1334_s4 + $0x4] sm:$0xf]  ;;  %v1264_v48 = vunpack.c.0.s8 %v251_v45 }
  0x14   :  { %v148_v7 = vsel %vm110_vm0, %v74_v5, 0  ;;  %265 = vperm.xlu2 %982, %v239_v11   ;;  %v515_v13 = vld [vmem:[%s1334_s4 + $0xc] sm:$0xf]  ;;  %v742_v16 = vld [vmem:[%s1336_s6] sm:$0xf]  ;;  %v966_v21 = vld [vmem:[%s1331_s1 + $0x10] sm:$0xff] }
  0x15   :  { %173 = vmatpush.bf16.xpose.msra.mxu0 %v139_v22  ;;  %310 = vperm.xlu0 %980, %v244_v46   ;;  %v965_v14 = vld [vmem:[%s1331_s1 + $0x8] sm:$0xff]  ;;  %v518_v18 = vld [vmem:[%s1334_s4 + $0x18] sm:$0xf]  ;;  %v743_v20 = vld [vmem:[%s1336_s6 + $0x4] sm:$0xf] }
  0x16   :  { %202 = vmatpush.bf16.xpose.msra.mxu1 %v163_v23  ;;  %292 = vperm.xlu1 %981, %v242_v54   ;;  %v240_v15 = vld [vmem:[%s1332_s2 + $0xc] sm:$0xf]  ;;  %v744_v17 = vld [vmem:[%s1336_s6 + $0x8] sm:$0xf]  ;;  %v517_v22 = vld [vmem:[%s1334_s4 + $0x14] sm:$0xf] }
  0x17   :  { %v829_v19 = vld [vmem:[%s1338_s8 + $0x8] sm:$0xff]  ;;  %v512_v23 = vld [vmem:[%s1334_s4] sm:$0xf]  ;;  %v967_v24 = vld [vmem:[%s1331_s1 + $0x18] sm:$0xff]  ;;  %s884_s2 = sshll.u32 %s1011_s24, 4  ;;  %s885_s2 = int_to_ptr.vmem [resolvable:$true] %s884_s2 }
  0x18   :  { %v745_v25 = vld [vmem:[%s1336_s6 + $0xc] sm:$0xf]  ;;  %v828_v26 = vld [vmem:[%s1338_s8] sm:$0xff] }
  0x1c   :  { %274 = vperm.xlu2 %982, %v240_v15  }
  0x1d   :  { %174 = vmatpush.bf16.xpose.msra.mxu0 %v136_v30  ;;  %247 = vperm.xlu0 %980, %v237_v57  }
  0x1e   :  { %203 = vmatpush.bf16.xpose.msra.mxu1 %v160_v31  ;;  %256 = vperm.xlu1 %981, %v238_v2  }
  0x24   :  { %576 = vperm.xlu2 %982, %v518_v18  }
  0x25   :  { %175 = vmatpush.bf16.xpose.msra.mxu0 %v133_v40  ;;  %585 = vperm.xlu0 %980, %v519_v3  }
  0x26   :  { %204 = vmatpush.bf16.xpose.msra.mxu1 %v157_v41  ;;  %558 = vperm.xlu1 %981, %v516_v10  }
  0x2c   :  { %567 = vperm.xlu2 %982, %v517_v22  }
  0x2d   :  { %176 = vmatpush.bf16.xpose.msra.mxu0 %v130_v50  ;;  %540 = vperm.xlu0 %980, %v514_v9  }
  0x2e   :  { %205 = vmatpush.bf16.xpose.msra.mxu1 %v154_v51  ;;  %549 = vperm.xlu1 %981, %v515_v13  }
  0x34   :  { %522 = vperm.xlu2 %982, %v512_v23  }
  0x35   :  { %177 = vmatpush.bf16.xpose.msra.mxu0 %v127_v60  ;;  %531 = vperm.xlu0 %980, %v513_v12  }
  0x36   :  { %206 = vmatpush.bf16.xpose.msra.mxu1 %v151_v61  ;;  %766 = vperm.xlu1 %981, %v744_v17  }
  0x3c   :  { %775 = vperm.xlu2 %982, %v745_v25  }
  0x3d   :  { %178 = vmatpush.bf16.xpose.msra.mxu0 %v124_v6  ;;  %748 = vperm.xlu0 %980, %v742_v16  }
  0x3e   :  { %207 = vmatpush.bf16.xpose.msra.mxu1 %v148_v7  ;;  %757 = vperm.xlu1 %981, %v743_v20  }
  0x44   :  { %914 = vmatmul.msk.bf16.vlgmr.msra.gmra.mxu0 %vm110_vm0, %v964_v8  ;;  %832 = vperm.xlu2 %982, %v828_v26  }
  0x45   :  { %918 = vmatmul.msk.bf16.vlgmr.msra.gmra.mxu1 %vm110_vm0, %v964_v8  ;;  %837 = vperm.xlu0 %980, %v829_v19  }
  0x54   :  { %915 = vmatmul.msk.bf16.gmra.mxu0 %vm110_vm0, %v965_v14 }
  0x55   :  { %919 = vmatmul.msk.bf16.gmra.mxu1 %vm110_vm0, %v965_v14 }
  0x64   :  { %916 = vmatmul.msk.bf16.gmra.mxu0 %vm110_vm0, %v966_v21 }
  0x65   :  { %920 = vmatmul.msk.bf16.gmra.mxu1 %vm110_vm0, %v966_v21 }
  0x6e   :  { %v266_v46 = vpop.permute.xlu2 %265 }
  0x6f   :  { %v271_v57 = vperm.slane %v266_v46, %v1264_v48 }
  0x71   :  { %v335_v9 = vunpack.c.l.bf16 %v271_v57 }
  0x74   :  { %917 = vmatmul.msk.bf16.gmra.mxu0 %vm110_vm0, %v967_v24 }
  0x75   :  { %921 = vmatmul.msk.bf16.gmra.mxu1 %vm110_vm0, %v967_v24 }
  0x76   :  { %v275_v0 = vpop.permute.xlu2 %274 }
  0x77   :  { %v280_v6 = vperm.slane %v275_v0, %v1264_v48 }
  0x79   :  { %v336_v22 = vunpack.c.l.bf16 %v280_v6 }
  0x7f   :  { %v302_v39 = vpop.permute.xlu0 %301 }
  0x80   :  { %v284_v36 = vpop.permute.xlu1 %283  ;;  %v307_v50 = vperm.slane %v302_v39, %v1264_v48 }
  0x81   :  { %v289_v52 = vperm.slane %v284_v36, %v1264_v48 }
  0x82   :  { %v339_v59 = vunpack.c.l.bf16 %v307_v50 }
  0x83   :  { %v337_v63 = vunpack.c.l.bf16 %v289_v52 }
  0x87   :  { %v311_v43 = vpop.permute.xlu0 %310 }
  0x88   :  { %v293_v42 = vpop.permute.xlu1 %292  ;;  %v316_v51 = vperm.slane %v311_v43, %v1264_v48 }
  0x89   :  { %v298_v55 = vperm.slane %v293_v42, %v1264_v48 }
  0x8a   :  { %v340_v62 = vunpack.c.l.bf16 %v316_v51 }
  0x8b   :  { %v338_v4 = vunpack.c.l.bf16 %v298_v55 }
  0x8f   :  { %v248_v56 = vpop.permute.xlu0 %247 }
  0x90   :  { %v257_v53 = vpop.permute.xlu1 %256  ;;  %v253_v5 = vperm.slane %v248_v56, %v1264_v48 }
  0x91   :  { %v262_v60 = vperm.slane %v257_v53, %v1264_v48 }
  0x92   :  { %v333_v46 = vunpack.c.l.bf16 %v253_v5 }
  0x93   :  { %v334_v13 = vunpack.c.l.bf16 %v262_v60 }
  0xc1   :  { %v180_v27 = vpop.f32.mrf.mxu0 }
  0xc2   :  { %v209_v28 = vpop.f32.mrf.mxu1 }
  0xc3   :  { %v1262_v29 = vpack.c.bf16 %v209_v28, %v180_v27 }
  0xc9   :  { %v182_v30 = vpop.f32.mrf.mxu0 }
  0xca   :  { %v211_v31 = vpop.f32.mrf.mxu1 }
  0xcb   :  { %v230_v21 = vpack.c.bf16 %v211_v31, %v182_v30 }
  0xd1   :  { %v185_v32 = vpop.f32.mrf.mxu0 }
  0xd2   :  { %v214_v33 = vpop.f32.mrf.mxu1 }
  0xd3   :  { %v231_v14 = vpack.c.bf16 %v214_v33, %v185_v32 }
  0xd9   :  { %v187_v34 = vpop.f32.mrf.mxu0 }
  0xda   :  { %v216_v35 = vpop.f32.mrf.mxu1 }
  0xdb   :  { %v232_v7 = vpack.c.bf16 %v216_v35, %v187_v34  ;;  %v321_v34 = vunpack.c.l.bf16 %v231_v14  ;;  %v322_v35 = vunpack.c.h.bf16 %v231_v14 }
  0xdd   :  { %v323_v23 = vunpack.c.l.bf16 %v232_v7  ;;  %v324_v24 = vunpack.c.h.bf16 %v232_v7  ;;  %v345_v52 = vadd.f32 %v335_v9, %v321_v34  ;;  %v346_v53 = vadd.f32 %v335_v9, %v322_v35  ;;  %v968_v7 = vld [vmem:[%s1333_s3] sm:$0xff]  ;;  %v970_v9 = vld [vmem:[%s1333_s3 + $0x10] sm:$0xff] }
  0xdf   :  { %v347_v42 = vadd.f32 %v336_v22, %v323_v23  ;;  %v348_v43 = vadd.f32 %v336_v22, %v324_v24  ;;  %v385_v60 = vmax.f32 %v345_v52, 0.0  ;;  %v586_v22 = vpop.permute.xlu0 %585  ;;  %v577_v23 = vpop.permute.xlu2 %576 }
  0xe1   :  { %v190_v37 = vpop.f32.mrf.mxu0 }
  0xe2   :  { %v219_v38 = vpop.f32.mrf.mxu1 }
  0xe3   :  { %v233_v61 = vpack.c.bf16 %v219_v38, %v190_v37 }
  0xe5   :  { %v325_v15 = vunpack.c.l.bf16 %v233_v61  ;;  %v326_v16 = vunpack.c.h.bf16 %v233_v61  ;;  %v386_v61 = vmax.f32 %v346_v53, 0.0 }
  0xe7   :  { %v349_v36 = vadd.f32 %v337_v63, %v325_v15  ;;  %v350_v37 = vadd.f32 %v337_v63, %v326_v16  ;;  %v568_v35 = vpop.permute.xlu2 %567 }
  0xe9   :  { %v192_v40 = vpop.f32.mrf.mxu0  ;;  %v389_v50 = vmax.f32 %v349_v36, 0.0  ;;  %v390_v51 = vmax.f32 %v350_v37, 0.0  ;;  %v591_v36 = vperm.slane %v586_v22, %v1264_v48  ;;  %v582_v37 = vperm.slane %v577_v23, %v1264_v48 }
  0xea   :  { %v221_v41 = vpop.f32.mrf.mxu1 }
  0xeb   :  { %v234_v58 = vpack.c.bf16 %v221_v41, %v192_v40  ;;  %v319_v40 = vunpack.c.l.bf16 %v230_v21  ;;  %v320_v41 = vunpack.c.h.bf16 %v230_v21 }
  0xed   :  { %v327_v10 = vunpack.c.l.bf16 %v234_v58  ;;  %v328_v11 = vunpack.c.h.bf16 %v234_v58  ;;  %v344_v55 = vadd.f32 %v334_v13, %v320_v41  ;;  %v387_v58 = vmax.f32 %v347_v42, 0.0 }
  0xef   :  { %v351_v27 = vadd.f32 %v338_v4, %v327_v10  ;;  %v352_v28 = vadd.f32 %v338_v4, %v328_v11  ;;  %v399_v0 = vpack.c.bf16 %v387_v58, %v385_v60  ;;  %v971_v10 = vld [vmem:[%s1333_s3 + $0x18] sm:$0xff] }
  0xf1   :  { %v195_v47 = vpop.f32.mrf.mxu0  ;;  %v391_v44 = vmax.f32 %v351_v27, 0.0  ;;  %v392_v45 = vmax.f32 %v352_v28, 0.0  ;;  %v541_v27 = vpop.permute.xlu0 %540 }
  0xf2   :  { %v224_v49 = vpop.f32.mrf.mxu1 }
  0xf3   :  { %v235_v54 = vpack.c.bf16 %v224_v49, %v195_v47  ;;  %v317_v47 = vunpack.c.l.bf16 %v1262_v29  ;;  %v318_v49 = vunpack.c.h.bf16 %v1262_v29  ;;  %v401_v56 = vpack.c.bf16 %v391_v44, %v389_v50 }
  0xf4   :  { %v402_v57 = vpack.c.bf16 %v392_v45, %v390_v51 }
  0xf5   :  { %v329_v1 = vunpack.c.l.bf16 %v235_v54  ;;  %v330_v2 = vunpack.c.h.bf16 %v235_v54  ;;  %v343_v54 = vadd.f32 %v334_v13, %v319_v40  ;;  %v342_v63 = vadd.f32 %v333_v46, %v318_v49 }
  0xf7   :  { %v353_v19 = vadd.f32 %v339_v59, %v329_v1  ;;  %v354_v20 = vadd.f32 %v339_v59, %v330_v2  ;;  %v388_v59 = vmax.f32 %v348_v43, 0.0  ;;  %v383_v1 = vmax.f32 %v343_v54, 0.0 }
  0xf8   :  { %v384_v2 = vmax.f32 %v344_v55, 0.0  ;;  %v382_v4 = vmax.f32 %v342_v63, 0.0 }
  0xf9   :  { %v197_v3 = vpop.f32.mrf.mxu0  ;;  %v393_v38 = vmax.f32 %v353_v19, 0.0  ;;  %v394_v33 = vmax.f32 %v354_v20, 0.0  ;;  %v400_v29 = vpack.c.bf16 %v388_v59, %v386_v61  ;;  %v532_v44 = vpop.permute.xlu0 %531 }
  0xfa   :  { %v226_v8 = vpop.f32.mrf.mxu1  ;;  %v398_v6 = vpack.c.bf16 %v384_v2, %v382_v4  ;;  %v537_v50 = vperm.slane %v532_v44, %v1264_v48 }
  0xfb   :  { %v236_v12 = vpack.c.bf16 %v226_v8, %v197_v3  ;;  %v969_v8 = vld [vmem:[%s1333_s3 + $0x8] sm:$0xff] }
  0xfd   :  { %v331_v17 = vunpack.c.l.bf16 %v236_v12  ;;  %v332_v18 = vunpack.c.h.bf16 %v236_v12 }
  0xff   :  { %v355_v25 = vadd.f32 %v340_v62, %v331_v17  ;;  %v356_v26 = vadd.f32 %v340_v62, %v332_v18  ;;  %v341_v62 = vadd.f32 %v333_v46, %v317_v47 }
 0x101   :  { %v395_v32 = vmax.f32 %v355_v25, 0.0  ;;  %v396_v39 = vmax.f32 %v356_v26, 0.0  ;;  %v381_v3 = vmax.f32 %v341_v62, 0.0  ;;  %v559_v26 = vpop.permute.xlu1 %558  ;;  %v523_v62 = vpop.permute.xlu2 %522 }
 0x102   :  { %v528_v2 = vperm.slane %v523_v62, %v1264_v48 }
 0x103   :  { %v403_v30 = vpack.c.bf16 %v395_v32, %v393_v38  ;;  %v404_v31 = vpack.c.bf16 %v396_v39, %v394_v33  ;;  %v397_v5 = vpack.c.bf16 %v383_v1, %v381_v3  ;;  %v546_v32 = vperm.slane %v541_v27, %v1264_v48 }
 0x104   :  { %v564_v33 = vperm.slane %v559_v26, %v1264_v48  ;;  %v573_v39 = vperm.slane %v568_v35, %v1264_v48  ;;  %v609_v27 = vunpack.c.l.bf16 %v537_v50 }
 0x105   :  { %450 = vmatpush.bf16.msra.mxu2 %v403_v30  ;;  %479 = vmatpush.bf16.msra.mxu3 %v404_v31  ;;  %v615_v30 = vunpack.c.l.bf16 %v591_v36  ;;  %v614_v31 = vunpack.c.l.bf16 %v582_v37  ;;  %v610_v47 = vunpack.c.l.bf16 %v546_v32  ;;  %v608_v32 = vunpack.c.l.bf16 %v528_v2 }
 0x106   :  { %v612_v49 = vunpack.c.l.bf16 %v564_v33  ;;  %v613_v54 = vunpack.c.l.bf16 %v573_v39 }
 0x109   :  { %451 = vmatpush.bf16.msra.mxu2 %v401_v56  ;;  %480 = vmatpush.bf16.msra.mxu3 %v402_v57  ;;  %v550_v40 = vpop.permute.xlu1 %549 }
 0x10a   :  { %v555_v42 = vperm.slane %v550_v40, %v1264_v48 }
 0x10c   :  { %v611_v58 = vunpack.c.l.bf16 %v555_v42 }
 0x10d   :  { %452 = vmatpush.bf16.msra.mxu2 %v399_v0  ;;  %481 = vmatpush.bf16.msra.mxu3 %v400_v29 }
 0x111   :  { %453 = vmatpush.bf16.msra.mxu2 %v397_v5  ;;  %482 = vmatpush.bf16.msra.mxu3 %v398_v6 }
 0x114   :  { %938 = vmatmul.msk.bf16.vlgmr.msra.gmra.mxu2 %vm433_vm1, %v968_v7  ;;  %942 = vmatmul.msk.bf16.vlgmr.msra.gmra.mxu3 %vm433_vm1, %v968_v7 }
 0x124   :  { %939 = vmatmul.msk.bf16.gmra.mxu2 %vm433_vm1, %v969_v8  ;;  %943 = vmatmul.msk.bf16.gmra.mxu3 %vm433_vm1, %v969_v8 }
 0x134   :  { %940 = vmatmul.msk.bf16.gmra.mxu2 %vm433_vm1, %v970_v9  ;;  %944 = vmatmul.msk.bf16.gmra.mxu3 %vm433_vm1, %v970_v9 }
 0x144   :  { %941 = vmatmul.msk.bf16.gmra.mxu2 %vm433_vm1, %v971_v10  ;;  %945 = vmatmul.msk.bf16.gmra.mxu3 %vm433_vm1, %v971_v10 }
 0x197   :  { %v455_v11 = vpop.f32.mrf.mxu2  ;;  %v484_v12 = vpop.f32.mrf.mxu3 }
 0x198   :  { %v1296_v13 = vpack.c.bf16 %v484_v12, %v455_v11 }
 0x19f   :  { %v457_v14 = vpop.f32.mrf.mxu2  ;;  %v486_v15 = vpop.f32.mrf.mxu3 }
 0x1a0   :  { %v505_v3 = vpack.c.bf16 %v486_v15, %v457_v14 }
 0x1a2   :  { %v595_v22 = vunpack.c.h.bf16 %v505_v3 }
 0x1a4   :  { %v619_v39 = vadd.f32 %v609_v27, %v595_v22 }
 0x1a6   :  { %v659_v50 = vmax.f32 %v619_v39, 0.0 }
 0x1a7   :  { %v460_v16 = vpop.f32.mrf.mxu2  ;;  %v489_v17 = vpop.f32.mrf.mxu3 }
 0x1a8   :  { %v506_v59 = vpack.c.bf16 %v489_v17, %v460_v16 }
 0x1aa   :  { %v596_v10 = vunpack.c.l.bf16 %v506_v59  ;;  %v597_v11 = vunpack.c.h.bf16 %v506_v59 }
 0x1ac   :  { %v620_v37 = vadd.f32 %v610_v47, %v596_v10 }
 0x1af   :  { %v462_v18 = vpop.f32.mrf.mxu2  ;;  %v491_v19 = vpop.f32.mrf.mxu3 }
 0x1b0   :  { %v507_v51 = vpack.c.bf16 %v491_v19, %v462_v18 }
 0x1b2   :  { %v598_v4 = vunpack.c.l.bf16 %v507_v51  ;;  %v599_v5 = vunpack.c.h.bf16 %v507_v51 }
 0x1b4   :  { %v622_v23 = vadd.f32 %v611_v58, %v598_v4 }
 0x1b6   :  { %v662_v42 = vmax.f32 %v622_v23, 0.0 }
 0x1b7   :  { %v465_v20 = vpop.f32.mrf.mxu2  ;;  %v494_v21 = vpop.f32.mrf.mxu3 }
 0x1b8   :  { %v508_v43 = vpack.c.bf16 %v494_v21, %v465_v20  ;;  %v594_v21 = vunpack.c.l.bf16 %v505_v3 }
 0x1ba   :  { %v600_v60 = vunpack.c.l.bf16 %v508_v43  ;;  %v601_v61 = vunpack.c.h.bf16 %v508_v43  ;;  %v618_v33 = vadd.f32 %v609_v27, %v594_v21 }
 0x1bc   :  { %v624_v12 = vadd.f32 %v612_v49, %v600_v60  ;;  %v625_v16 = vadd.f32 %v612_v49, %v601_v61  ;;  %v658_v49 = vmax.f32 %v618_v33, 0.0  ;;  %v767_v60 = vpop.permute.xlu1 %766 }
 0x1be   :  { %v664_v35 = vmax.f32 %v624_v12, 0.0  ;;  %v665_v36 = vmax.f32 %v625_v16, 0.0 }
 0x1bf   :  { %v467_v24 = vpop.f32.mrf.mxu2  ;;  %v496_v25 = vpop.f32.mrf.mxu3 }
 0x1c0   :  { %v509_v41 = vpack.c.bf16 %v496_v25, %v467_v24  ;;  %v623_v24 = vadd.f32 %v611_v58, %v599_v5 }
 0x1c2   :  { %v602_v55 = vunpack.c.l.bf16 %v509_v41  ;;  %v603_v56 = vunpack.c.h.bf16 %v509_v41  ;;  %v663_v43 = vmax.f32 %v623_v24, 0.0 }
 0x1c4   :  { %v626_v8 = vadd.f32 %v613_v54, %v602_v55  ;;  %v627_v9 = vadd.f32 %v613_v54, %v603_v56  ;;  %v972_v54 = vld [vmem:[%s1335_s5] sm:$0xff]  ;;  %v973_v55 = vld [vmem:[%s1335_s5 + $0x8] sm:$0xff] }
 0x1c6   :  { %v666_v15 = vmax.f32 %v626_v8, 0.0  ;;  %v667_v26 = vmax.f32 %v627_v9, 0.0 }
 0x1c7   :  { %v470_v28 = vpop.f32.mrf.mxu2  ;;  %v499_v34 = vpop.f32.mrf.mxu3 }
 0x1c8   :  { %v510_v38 = vpack.c.bf16 %v499_v34, %v470_v28  ;;  %v592_v28 = vunpack.c.l.bf16 %v1296_v13  ;;  %v593_v34 = vunpack.c.h.bf16 %v1296_v13  ;;  %v676_v40 = vpack.c.bf16 %v666_v15, %v664_v35 }
 0x1c9   :  { %v677_v41 = vpack.c.bf16 %v667_v26, %v665_v36 }
 0x1ca   :  { %v604_v45 = vunpack.c.l.bf16 %v510_v38  ;;  %v605_v46 = vunpack.c.h.bf16 %v510_v38  ;;  %v621_v38 = vadd.f32 %v610_v47, %v597_v11  ;;  %v616_v44 = vadd.f32 %v608_v32, %v592_v28 }
 0x1cc   :  { %v628_v29 = vadd.f32 %v614_v31, %v604_v45  ;;  %v629_v1 = vadd.f32 %v614_v31, %v605_v46  ;;  %v661_v31 = vmax.f32 %v621_v38, 0.0  ;;  %v617_v45 = vadd.f32 %v608_v32, %v593_v34 }
 0x1cd   :  { %v656_v47 = vmax.f32 %v616_v44, 0.0  ;;  %v974_v44 = vld [vmem:[%s1337_s7] sm:$0xff]  ;;  %s886_s7 = sshll.u32 %s1339_s9, 4  ;;  %s887_s7 = int_to_ptr.hbm [resolvable:$true] %s886_s7 }
 0x1ce   :  { %v668_v17 = vmax.f32 %v628_v29, 0.0  ;;  %v669_v19 = vmax.f32 %v629_v1, 0.0  ;;  %v675_v46 = vpack.c.bf16 %v663_v43, %v661_v31  ;;  %v657_v51 = vmax.f32 %v617_v45, 0.0  ;;  %v776_v1 = vpop.permute.xlu2 %775 }
 0x1cf   :  { %v472_v52 = vpop.f32.mrf.mxu2  ;;  %v501_v53 = vpop.f32.mrf.mxu3  ;;  %v772_v29 = vperm.slane %v767_v60, %v1264_v48  ;;  %v781_v3 = vperm.slane %v776_v1, %v1264_v48 }
 0x1d0   :  { %v511_v57 = vpack.c.bf16 %v501_v53, %v472_v52  ;;  %v672_v52 = vpack.c.bf16 %v658_v49, %v656_v47  ;;  %v673_v53 = vpack.c.bf16 %v659_v50, %v657_v51 }
 0x1d1   :  { %v792_v12 = vunpack.c.l.bf16 %v772_v29 }
 0x1d2   :  { %v606_v63 = vunpack.c.l.bf16 %v511_v57  ;;  %v607_v0 = vunpack.c.h.bf16 %v511_v57 }
 0x1d4   :  { %v630_v6 = vadd.f32 %v615_v30, %v606_v63  ;;  %v631_v7 = vadd.f32 %v615_v30, %v607_v0  ;;  %v660_v30 = vmax.f32 %v620_v37, 0.0  ;;  %v758_v63 = vpop.permute.xlu1 %757 }
 0x1d5   :  { %v763_v4 = vperm.slane %v758_v63, %v1264_v48 }
 0x1d6   :  { %v670_v18 = vmax.f32 %v630_v6, 0.0  ;;  %v671_v20 = vmax.f32 %v631_v7, 0.0  ;;  %v674_v13 = vpack.c.bf16 %v662_v42, %v660_v30  ;;  %v749_v6 = vpop.permute.xlu0 %748  ;;  %v833_v45 = vpop.permute.xlu2 %832 }
 0x1d7   :  { %v754_v9 = vperm.slane %v749_v6, %v1264_v48 }
 0x1d8   :  { %v678_v25 = vpack.c.bf16 %v670_v18, %v668_v17  ;;  %v679_v14 = vpack.c.bf16 %v671_v20, %v669_v19  ;;  %v793_v19 = vunpack.c.l.bf16 %v781_v3  ;;  %v791_v20 = vunpack.c.l.bf16 %v763_v4 }
 0x1d9   :  { %v790_v15 = vunpack.c.l.bf16 %v754_v9 }
 0x1da   :  { %704 = vmatpush.bf16.msrb.mxu2 %v678_v25  ;;  %723 = vmatpush.bf16.msrb.mxu3 %v679_v14 }
 0x1de   :  { %705 = vmatpush.bf16.msrb.mxu2 %v676_v40  ;;  %724 = vmatpush.bf16.msrb.mxu3 %v677_v41  ;;  %v838_v51 = vpop.permute.xlu0 %837 }
 0x1e2   :  { %706 = vmatpush.bf16.msrb.mxu2 %v674_v13  ;;  %725 = vmatpush.bf16.msrb.mxu3 %v675_v46 }
 0x1e6   :  { %707 = vmatpush.bf16.msrb.mxu2 %v672_v52  ;;  %726 = vmatpush.bf16.msrb.mxu3 %v673_v53 }
 0x1e9   :  { %954 = vmatmul.msk.bf16.vlgmr.msrb.gmra.mxu2 %vm433_vm1, %v972_v54  ;;  %956 = vmatmul.msk.bf16.vlgmr.msrb.gmra.mxu3 %vm433_vm1, %v972_v54 }
 0x1f9   :  { %955 = vmatmul.msk.bf16.gmra.mxu2 %vm433_vm1, %v973_v55  ;;  %957 = vmatmul.msk.bf16.gmra.mxu3 %vm433_vm1, %v973_v55 }
 0x26c   :  { %v709_v56 = vpop.f32.mrf.mxu2  ;;  %v728_v57 = vpop.f32.mrf.mxu3 }
 0x26d   :  { %v738_v5 = vpack.c.bf16 %v728_v57, %v709_v56 }
 0x26f   :  { %v782_v21 = vunpack.c.l.bf16 %v738_v5  ;;  %v783_v22 = vunpack.c.h.bf16 %v738_v5 }
 0x271   :  { %v794_v48 = vadd.f32 %v790_v15, %v782_v21  ;;  %v795_v35 = vadd.f32 %v790_v15, %v783_v22 }
 0x273   :  { %v814_v42 = vmax.f32 %v794_v48, 0.0  ;;  %v815_v43 = vmax.f32 %v795_v35, 0.0 }
 0x274   :  { %v711_v58 = vpop.f32.mrf.mxu2  ;;  %v730_v59 = vpop.f32.mrf.mxu3 }
 0x275   :  { %v739_v2 = vpack.c.bf16 %v730_v59, %v711_v58 }
 0x277   :  { %v784_v16 = vunpack.c.l.bf16 %v739_v2  ;;  %v785_v17 = vunpack.c.h.bf16 %v739_v2 }
 0x279   :  { %v796_v26 = vadd.f32 %v791_v20, %v784_v16  ;;  %v797_v27 = vadd.f32 %v791_v20, %v785_v17 }
 0x27b   :  { %v816_v33 = vmax.f32 %v796_v26, 0.0  ;;  %v817_v39 = vmax.f32 %v797_v27, 0.0 }
 0x27c   :  { %v714_v61 = vpop.f32.mrf.mxu2  ;;  %v733_v62 = vpop.f32.mrf.mxu3 }
 0x27d   :  { %v740_v0 = vpack.c.bf16 %v733_v62, %v714_v61  ;;  %v822_v30 = vpack.c.bf16 %v816_v33, %v814_v42  ;;  %v823_v31 = vpack.c.bf16 %v817_v39, %v815_v43 }
 0x27f   :  { %v786_v7 = vunpack.c.l.bf16 %v740_v0  ;;  %v787_v8 = vunpack.c.h.bf16 %v740_v0 }
 0x281   :  { %v798_v23 = vadd.f32 %v792_v12, %v786_v7  ;;  %v799_v24 = vadd.f32 %v792_v12, %v787_v8 }
 0x283   :  { %v818_v36 = vmax.f32 %v798_v23, 0.0  ;;  %v819_v37 = vmax.f32 %v799_v24, 0.0 }
 0x284   :  { %v716_v10 = vpop.f32.mrf.mxu2  ;;  %v735_v11 = vpop.f32.mrf.mxu3 }
 0x285   :  { %v741_v18 = vpack.c.bf16 %v735_v11, %v716_v10 }
 0x287   :  { %v788_v25 = vunpack.c.l.bf16 %v741_v18  ;;  %v789_v14 = vunpack.c.h.bf16 %v741_v18 }
 0x289   :  { %v800_v28 = vadd.f32 %v793_v19, %v788_v25  ;;  %v801_v34 = vadd.f32 %v793_v19, %v789_v14 }
 0x28b   :  { %v820_v38 = vmax.f32 %v800_v28, 0.0  ;;  %v821_v32 = vmax.f32 %v801_v34, 0.0 }
 0x28d   :  { %v824_v40 = vpack.c.bf16 %v820_v38, %v818_v36  ;;  %v825_v41 = vpack.c.bf16 %v821_v32, %v819_v37 }
 0x28f   :  { %854 = vmatpush.bf16.msra.mxu2 %v824_v40  ;;  %868 = vmatpush.bf16.msra.mxu3 %v825_v41 }
 0x293   :  { %855 = vmatpush.bf16.msra.mxu2 %v822_v30  ;;  %869 = vmatpush.bf16.msra.mxu3 %v823_v31 }
 0x296   :  { %962 = vmatmul.msk.bf16.vlgmr.msra.gmra.mxu2 %vm110_vm0, %v974_v44  ;;  %963 = vmatmul.msk.bf16.vlgmr.msra.gmra.mxu3 %vm110_vm0, %v974_v44 }
 0x319   :  { %v857_v13 = vpop.f32.mrf.mxu2  ;;  %v871_v46 = vpop.f32.mrf.mxu3 }
 0x31a   :  { %v858_v49 = vadd.f32 %v857_v13, %v833_v45  ;;  %v872_v50 = vadd.f32 %v871_v46, %v833_v45 }
 0x31c   :  { %v876_v47 = vpack.c.bf16 %v872_v50, %v858_v49 }
 0x31e   :  { %878 = vst [vmem:[#allocation2] sm:$0xff] %v876_v47 }
 0x321   :  { %v859_v52 = vpop.f32.mrf.mxu2  ;;  %v873_v53 = vpop.f32.mrf.mxu3 }
 0x322   :  { %v860_v54 = vadd.f32 %v859_v52, %v838_v51  ;;  %v874_v55 = vadd.f32 %v873_v53, %v838_v51 }
 0x324   :  { %v877_v56 = vpack.c.bf16 %v874_v55, %v860_v54 }
 0x326   :  { %879 = vst [vmem:[#allocation2 + $0x8] sm:$0xff] %v877_v56 }
 0x327   :  { %892 = dma.vmem_to_hbm [thread:$0]  %s885_s2, 256, %s887_s7, [#allocation3], %s1012_s27, %s1012_s27, %s1013_s28  }
 0x328   :  { %1007 = dma.done.wait [#allocation3], 256  }
 0x329   :  { %1008 = vsyncadd [#allocation3], 4294967040 }
 0x32a   :  { %897 = vsyncpa [#allocation3], 1 }

</bundles_post_ra>
